<compile_context>
chip_gen: v6e
topology: v6e:2x2x1
jax: 0.10.0
libtpu: 0.0.40
codegen_flags: <defaults>
</compile_context>

<pallas_src>
import jax
import jax.numpy as jnp
from jax.experimental import pallas as pl
from jax.experimental.pallas import tpu as pltpu

LN_EPS = 1e-5


def reward_kernel(h_ref, w1_ref, b1_ref, g_ref, be_ref, w2r_ref, b2_ref, out_ref):
    # ---- Linear(feature_dim -> hidden_dim): MXU, f32 accumulate ----
    x = jnp.dot(h_ref[...], w1_ref[...], preferred_element_type=jnp.float32)
    x = x + b1_ref[...]

    # ---- LayerNorm(hidden_dim) in f32 ----
    mean = jnp.mean(x, axis=-1, keepdims=True)
    var = jnp.mean((x - mean) ** 2, axis=-1, keepdims=True)
    x = (x - mean) * jax.lax.rsqrt(var + LN_EPS)
    x = x * g_ref[...] + be_ref[...]

    # ---- ReLU ----
    x = jnp.maximum(x, 0.0)

    # ---- Linear(hidden_dim -> 1) as a lane-dense row ----
    # w2 is stored as a (1, H) row; contract H of both operands so the TILE_B
    # rewards land along lanes: (1, H) x (TILE_B, H) -> (1, TILE_B).
    r = jax.lax.dot_general(
        w2r_ref[...], x.astype(w2r_ref.dtype),
        dimension_numbers=(((1,), (1,)), ((), ())),
        preferred_element_type=jnp.float32)
    out_ref[...] = (r + b2_ref[...]).astype(out_ref.dtype)


def reward_forward(h, params, *, tile_b=128, weight_dtype=None):
    """h: [B, feature_dim]. Returns r: [B, 1] (f32).

    weight_dtype=jnp.bfloat16 casts the matmul operands (h, W1, W2) to bf16 for
    the MXU while keeping f32 accumulation and f32 LayerNorm/elementwise math.
    """
    w1, b1, g, be, w2, b2 = params
    B, feature_dim = h.shape
    hidden_dim = w1.shape[1]

    if weight_dtype is not None:
        h = h.astype(weight_dtype)
        w1 = w1.astype(weight_dtype)
        w2 = w2.astype(weight_dtype)

    # Store the final Linear's weight as a (1, hidden_dim) row (lane-major).
    w2r = w2.reshape(1, hidden_dim)
    b2s = jnp.asarray(b2, jnp.float32).reshape(1, 1)

    # Pad the batch to a multiple of the tile.
    n_tiles = pl.cdiv(B, tile_b)
    b_pad = n_tiles * tile_b
    if b_pad != B:
        h = jnp.pad(h, ((0, b_pad - B), (0, 0)))

    vmem = pltpu.MemorySpace.VMEM

    def resident(shape):
        # Constant index_map: block never changes -> stays VMEM-resident.
        return pl.BlockSpec(shape, lambda i: (0,) * len(shape), memory_space=vmem)

    in_specs = [
        pl.BlockSpec((tile_b, feature_dim), lambda i: (i, 0), memory_space=vmem),
        resident(w1.shape), resident(b1.shape),
        resident(g.shape), resident(be.shape),
        resident(w2r.shape), resident(b2s.shape),
    ]
    # Rewards for tile i occupy lanes [i*tile_b, (i+1)*tile_b) of a single row:
    # unmasked, lane-dense stores and only 4 bytes/row of output traffic.
    out_specs = pl.BlockSpec((1, tile_b), lambda i: (0, i), memory_space=vmem)

    out = pl.pallas_call(
        reward_kernel,
        out_shape=jax.ShapeDtypeStruct((1, b_pad), jnp.float32),
        grid=(n_tiles,),
        in_specs=in_specs,
        out_specs=out_specs,
        compiler_params=pltpu.CompilerParams(
            dimension_semantics=("parallel",)),
    )(h, w1, b1, g, be, w2r, b2s)

    return out[0, :B].reshape(B, 1)


def init_params(key, feature_dim, hidden_dim):
    """Synthetic deterministic init (stand-in for utils.weight_init)."""
    k1, k2 = jax.random.split(key)
    w1 = jax.random.normal(k1, (feature_dim, hidden_dim), jnp.float32) / jnp.sqrt(
        jnp.float32(feature_dim))
    b1 = jnp.zeros((1, hidden_dim), jnp.float32)
    gamma = jnp.ones((1, hidden_dim), jnp.float32)    # LayerNorm weight
    beta = jnp.zeros((1, hidden_dim), jnp.float32)    # LayerNorm bias
    w2 = jax.random.normal(k2, (hidden_dim, 1), jnp.float32) / jnp.sqrt(
        jnp.float32(hidden_dim))
    b2 = jnp.zeros((1, 1), jnp.float32)
    return (w1, b1, gamma, beta, w2, b2)


def reward_ref(h, params, weight_dtype=None):
    """Pure-JAX reference (matching any bf16 casting the kernel path does)."""
    w1, b1, g, be, w2, b2 = params
    if weight_dtype is not None:
        h = h.astype(weight_dtype)
        w1 = w1.astype(weight_dtype)
        w2 = w2.astype(weight_dtype)
    hp = jax.lax.Precision.HIGHEST
    x = jnp.dot(h, w1, preferred_element_type=jnp.float32, precision=hp) + b1
    mean = x.mean(-1, keepdims=True)
    var = ((x - mean) ** 2).mean(-1, keepdims=True)
    x = (x - mean) * jax.lax.rsqrt(var + LN_EPS) * g + be
    x = jnp.maximum(x, 0.0)
    r = jnp.dot(x.astype(w2.dtype), w2, preferred_element_type=jnp.float32,
                precision=hp) + b2
    return r


if __name__ == "__main__":
    # Small shapes consistent with the module (feature_dim -> hidden_dim -> 1),
    # with enough batch to exercise the 128-row batch grid.
    B = 256
    feature_dim = 64
    hidden_dim = 128

    key = jax.random.PRNGKey(0)
    k_h, k_p = jax.random.split(key)
    h = jax.random.normal(k_h, (B, feature_dim), jnp.float32)
    params = init_params(k_p, feature_dim, hidden_dim)

    # f32 path: strict check against the pure-JAX reference.
    r = reward_forward(h, params, tile_b=128)
    jax.block_until_ready(r)
    r_ref = reward_ref(h, params)
    assert r.shape == (B, 1), r.shape
    assert jnp.allclose(r, r_ref, atol=1e-5, rtol=1e-5), "f32 reward mismatch"

    # Ragged batch (exercises the zero-padding / slicing path).
    Br = 200
    hr = h[:Br]
    rr = reward_forward(hr, params, tile_b=128)
    jax.block_until_ready(rr)
    assert rr.shape == (Br, 1), rr.shape
    assert jnp.allclose(rr, r_ref[:Br], atol=1e-5, rtol=1e-5), "ragged mismatch"

    # bf16-weight path (v6e/v7x MXU-friendly), checked against a reference
    # that applies the same bf16 casts (f32 accumulation in both).
    r16 = reward_forward(h, params, tile_b=128, weight_dtype=jnp.bfloat16)
    jax.block_until_ready(r16)
    r16_ref = reward_ref(h, params, weight_dtype=jnp.bfloat16)
    assert jnp.allclose(r16, r16_ref, atol=2e-3, rtol=1e-2), "bf16 reward mismatch"

    print("KERNEL_OK")
</pallas_src>

<mosaic_0001>
module attributes {stable_mosaic.version = 11 : i64} {
  func.func @reward_kernel(%arg0: i32, %arg1: memref<128x64xf32, #tpu.memory_space<vmem>>, %arg2: memref<64x128xf32, #tpu.memory_space<vmem>>, %arg3: memref<1x128xf32, #tpu.memory_space<vmem>>, %arg4: memref<1x128xf32, #tpu.memory_space<vmem>>, %arg5: memref<1x128xf32, #tpu.memory_space<vmem>>, %arg6: memref<1x128xf32, #tpu.memory_space<vmem>>, %arg7: memref<1x1xf32, #tpu.memory_space<vmem>>, %arg8: memref<1x128xf32, #tpu.memory_space<vmem>>) attributes {dimension_semantics = [#tpu.dimension_semantics<parallel>], iteration_bounds = array<i64: 2>, scalar_prefetch = 0 : i64, scratch_operands = 0 : i64, tpu.core_type = #tpu.core_type<tc>, window_params = [{transform_indices = @transform_0, window_bounds = array<i64: 128, 64>}, {pipeline_mode = #tpu.pipeline_mode<synchronous>, transform_indices = @transform_1, window_bounds = array<i64: 64, 128>}, {pipeline_mode = #tpu.pipeline_mode<synchronous>, transform_indices = @transform_2, window_bounds = array<i64: 1, 128>}, {pipeline_mode = #tpu.pipeline_mode<synchronous>, transform_indices = @transform_3, window_bounds = array<i64: 1, 128>}, {pipeline_mode = #tpu.pipeline_mode<synchronous>, transform_indices = @transform_4, window_bounds = array<i64: 1, 128>}, {pipeline_mode = #tpu.pipeline_mode<synchronous>, transform_indices = @transform_5, window_bounds = array<i64: 1, 128>}, {pipeline_mode = #tpu.pipeline_mode<synchronous>, transform_indices = @transform_6, window_bounds = array<i64: 1, 1>}, {transform_indices = @transform_7, window_bounds = array<i64: 1, 128>}]} {
    %c0 = arith.constant 0 : index
    %c0_0 = arith.constant 0 : index
    %0 = vector.load %arg1[%c0, %c0_0] : memref<128x64xf32, #tpu.memory_space<vmem>>, vector<128x64xf32>
    %c0_1 = arith.constant 0 : index
    %c0_2 = arith.constant 0 : index
    %1 = vector.load %arg2[%c0_1, %c0_2] : memref<64x128xf32, #tpu.memory_space<vmem>>, vector<64x128xf32>
    %cst = arith.constant dense<0.000000e+00> : vector<128x128xf32>
    %2 = tpu.matmul %0, %1, %cst {dimension_numbers = #tpu.dot_dimension_numbers<[1], [0], [0], [1], [0, 0, 1, 1], [], []>} : vector<128x64xf32>, vector<64x128xf32>, vector<128x128xf32> -> vector<128x128xf32>
    %c0_3 = arith.constant 0 : index
    %c0_4 = arith.constant 0 : index
    %3 = vector.load %arg3[%c0_3, %c0_4] : memref<1x128xf32, #tpu.memory_space<vmem>>, vector<1x128xf32>
    %4 = vector.broadcast %3 : vector<1x128xf32> to vector<128x128xf32>
    %5 = arith.addf %2, %4 : vector<128x128xf32>
    %cst_5 = arith.constant dense<0.000000e+00> : vector<128xf32>
    %6 = vector.multi_reduction <add>, %5, %cst_5 [1] : vector<128x128xf32> to vector<128xf32>
    %7 = vector.shape_cast %6 : vector<128xf32> to vector<128x1xf32>
    %cst_6 = arith.constant 1.280000e+02 : f32
    %8 = vector.broadcast %cst_6 : f32 to vector<128x1xf32>
    %9 = arith.divf %7, %8 : vector<128x1xf32>
    %10 = vector.broadcast %9 : vector<128x1xf32> to vector<128x128xf32>
    %11 = arith.subf %5, %10 : vector<128x128xf32>
    %12 = arith.mulf %11, %11 : vector<128x128xf32>
    %cst_7 = arith.constant dense<0.000000e+00> : vector<128xf32>
    %13 = vector.multi_reduction <add>, %12, %cst_7 [1] : vector<128x128xf32> to vector<128xf32>
    %14 = vector.shape_cast %13 : vector<128xf32> to vector<128x1xf32>
    %cst_8 = arith.constant 1.280000e+02 : f32
    %15 = vector.broadcast %cst_8 : f32 to vector<128x1xf32>
    %16 = arith.divf %14, %15 : vector<128x1xf32>
    %17 = vector.broadcast %9 : vector<128x1xf32> to vector<128x128xf32>
    %18 = arith.subf %5, %17 : vector<128x128xf32>
    %cst_9 = arith.constant 9.99999974E-6 : f32
    %19 = vector.broadcast %cst_9 : f32 to vector<128x1xf32>
    %20 = arith.addf %16, %19 : vector<128x1xf32>
    %21 = math.rsqrt %20 : vector<128x1xf32>
    %22 = vector.broadcast %21 : vector<128x1xf32> to vector<128x128xf32>
    %23 = arith.mulf %18, %22 : vector<128x128xf32>
    %c0_10 = arith.constant 0 : index
    %c0_11 = arith.constant 0 : index
    %24 = vector.load %arg4[%c0_10, %c0_11] : memref<1x128xf32, #tpu.memory_space<vmem>>, vector<1x128xf32>
    %25 = vector.broadcast %24 : vector<1x128xf32> to vector<128x128xf32>
    %26 = arith.mulf %23, %25 : vector<128x128xf32>
    %c0_12 = arith.constant 0 : index
    %c0_13 = arith.constant 0 : index
    %27 = vector.load %arg5[%c0_12, %c0_13] : memref<1x128xf32, #tpu.memory_space<vmem>>, vector<1x128xf32>
    %28 = vector.broadcast %27 : vector<1x128xf32> to vector<128x128xf32>
    %29 = arith.addf %26, %28 : vector<128x128xf32>
    %cst_14 = arith.constant 0.000000e+00 : f32
    %30 = vector.broadcast %cst_14 : f32 to vector<128x128xf32>
    %31 = arith.maximumf %29, %30 : vector<128x128xf32>
    %c0_15 = arith.constant 0 : index
    %c0_16 = arith.constant 0 : index
    %32 = vector.load %arg6[%c0_15, %c0_16] : memref<1x128xf32, #tpu.memory_space<vmem>>, vector<1x128xf32>
    %cst_17 = arith.constant dense<0.000000e+00> : vector<1x128xf32>
    %33 = tpu.matmul %32, %31, %cst_17 {dimension_numbers = #tpu.dot_dimension_numbers<[1], [1], [0], [0], [0, 0, 1, 0], [], []>} : vector<1x128xf32>, vector<128x128xf32>, vector<1x128xf32> -> vector<1x128xf32>
    %c0_18 = arith.constant 0 : index
    %c0_19 = arith.constant 0 : index
    %34 = vector.load %arg7[%c0_18, %c0_19] : memref<1x1xf32, #tpu.memory_space<vmem>>, vector<1x1xf32>
    %35 = vector.broadcast %34 : vector<1x1xf32> to vector<1x128xf32>
    %36 = arith.addf %33, %35 : vector<1x128xf32>
    %c0_20 = arith.constant 0 : index
    %c0_21 = arith.constant 0 : index
    %37 = vector.load %arg8[%c0_20, %c0_21] : memref<1x128xf32, #tpu.memory_space<vmem>>, vector<1x128xf32>
    tpu.vector_store %arg8[%c0_20, %c0_21], %36 {strides = array<i32>} : memref<1x128xf32, #tpu.memory_space<vmem>>, vector<1x128xf32>,
    return
  }
  func.func @transform_0(%arg0: i32) -> (i32, i32) {
    %c0_i32 = arith.constant 0 : i32
    %c0_i32_0 = arith.constant 0 : i32
    return %arg0, %c0_i32 : i32, i32
  }
  func.func @transform_1(%arg0: i32) -> (i32, i32) {
    %c0_i32 = arith.constant 0 : i32
    %c0_i32_0 = arith.constant 0 : i32
    %c0_i32_1 = arith.constant 0 : i32
    return %c0_i32, %c0_i32_0 : i32, i32
  }
  func.func @transform_2(%arg0: i32) -> (i32, i32) {
    %c0_i32 = arith.constant 0 : i32
    %c0_i32_0 = arith.constant 0 : i32
    %c0_i32_1 = arith.constant 0 : i32
    return %c0_i32, %c0_i32_0 : i32, i32
  }
  func.func @transform_3(%arg0: i32) -> (i32, i32) {
    %c0_i32 = arith.constant 0 : i32
    %c0_i32_0 = arith.constant 0 : i32
    %c0_i32_1 = arith.constant 0 : i32
    return %c0_i32, %c0_i32_0 : i32, i32
  }
  func.func @transform_4(%arg0: i32) -> (i32, i32) {
    %c0_i32 = arith.constant 0 : i32
    %c0_i32_0 = arith.constant 0 : i32
    %c0_i32_1 = arith.constant 0 : i32
    return %c0_i32, %c0_i32_0 : i32, i32
  }
  func.func @transform_5(%arg0: i32) -> (i32, i32) {
    %c0_i32 = arith.constant 0 : i32
    %c0_i32_0 = arith.constant 0 : i32
    %c0_i32_1 = arith.constant 0 : i32
    return %c0_i32, %c0_i32_0 : i32, i32
  }
  func.func @transform_6(%arg0: i32) -> (i32, i32) {
    %c0_i32 = arith.constant 0 : i32
    %c0_i32_0 = arith.constant 0 : i32
    %c0_i32_1 = arith.constant 0 : i32
    return %c0_i32, %c0_i32_0 : i32, i32
  }
  func.func @transform_7(%arg0: i32) -> (i32, i32) {
    %c0_i32 = arith.constant 0 : i32
    %c0_i32_0 = arith.constant 0 : i32
    return %c0_i32, %arg0 : i32, i32
  }
}

</mosaic_0001>

<bundles_post_ra>
// kernel: tpu_custom_call.1
= control target key start
LH: loop header
LB: loop body
LE: loop exit
PB: predicated region body
PF: predicated region fallthrough
CT: control target
= control target key end

     0   :  { %s1541_s0 = inlined_call_operand.vmem [shape: f32[256,64], index: 0, kind: input, shape index: {}]   ;;  %s1542_s1 = inlined_call_operand.vmem [shape: f32[64,128], index: 1, kind: input, shape index: {}]   ;;  %s1543_s2 = inlined_call_operand.vmem [shape: f32[1,128], index: 2, kind: input, shape index: {}]   ;;  %s1544_s3 = inlined_call_operand.vmem [shape: f32[1,128], index: 3, kind: input, shape index: {}]   ;;  %s1545_s4 = inlined_call_operand.vmem [shape: f32[1,128], index: 4, kind: input, shape index: {}]   ;;  %s1546_s5 = inlined_call_operand.vmem [shape: f32[1,128], index: 5, kind: input, shape index: {}]   ;;  %s1547_s6 = inlined_call_operand.<no memory space> [shape: f32[1,1], index: 6, kind: input, shape index: {}]   ;;  %s1548_s7 = inlined_call_operand.hbm [shape: f32[1,256], index: 7, kind: output, shape index: {}]  }
   0x1   :  { %v12_v0 = vstv %s1547_s6 }
   0x2   :  { %13 = vst [vmem:[#allocation2] sm:$0x1] %v12_v0 }
   0x3   :  { %14 = vsyncpa [#allocation4], 0 }
   0x4   :  { %16 = vsyncpa [#allocation4 + $0x1], 0  ;;  %s1222_s26 = smov 0   ;;  %s1224_s27 = smov 0  }
   0x5   :  { %s1226_s28 = smov 0   ;;  %s1228_s29 = smov 0  }
   0x6 LB: > { %s893_s6 = sadd.s32 4294967295, %s1173_s29   ;;  %s894_s30 = sadd.s32 4294967294, %s1173_s29   ;;  %s1173_s29 = sphi %s1228_s29, %s1554_s29   ;;  %s1169_s28 = sphi %s1226_s28, %s1553_s28   ;;  %s1165_s27 = sphi %s1224_s27, %s1552_s27   ;;  %s1161_s26 = sphi %s1222_s26, %s1551_s26  }
   0x7   : > { %s1245_s8 = sadd.s32 1, %s1173_s29   ;;  %s181_s9 = sadd.s32 1, %s1169_s28 }
   0x8   : > { %s178_s10 = ssub.s32 %s1173_s29, %s1245_s8  ;;  %p191_p0 = scmp.ne.s32.totalorder %s1169_s28, %s1165_s27 }
   0x9   : > { %p179_p1 = scmp.eq.s32.totalorder %s178_s10, 0  ;;  %p192_p2 = scmp.eq.s32.totalorder %s893_s6, 1 }
   0xa   : > { %p197_p3 = scmp.ne.s32.totalorder %s1165_s27, %s1161_s26  ;;  %p198_p4 = scmp.eq.s32.totalorder %s894_s30, 1 }
   0xb   : > { %s1255_s11 = scalar_select %p179_p1, %s1169_s28, %s181_s9  }
   0xc   : > { %p1257_p5 = por %p192_p2, %p191_p0  ;;  %p1261_p6 = por %p198_p4, %p197_p3 }
   0xd   : > { %p897_p7 = scmp.ge.s32.totalorder %s1173_s29, 1  ;;  %p243_p8 = scmp.lt.s32.totalorder %s1173_s29, 3 }
   0xf   : > { %p244_p9 = pnand %p897_p7, %p243_p8 }
  0x10   : > { %s1273_s18 = sshll.u32 (!%p244_p9), %s893_s6, 4  ;;  %s1178_s22 = smov (!%p244_p9), [#allocation3]  }
  0x11   : > { %247 = sbr.rel (%p244_p9) target bundleno = 842 (0x34a), region = 48  ;;  %p275_p10 = scmp.lt.s32.totalorder (!%p244_p9), %s1273_s18, 31 }
  0x12   : > { %s1506_s19 = scalar_lea.hbm (!%p244_p9), %s1548_s7, %s1273_s18  ;;  %s1117_s23 = sshll.u32 (!%p244_p9), %s1178_s22, 4  ;;  %s1118_s23 = int_to_ptr.vmem [resolvable:$false] %s1117_s23 }
  0x16   : > { %v303_v1 = vld [vmem:[%s1542_s1 + $0x38] sm:$0xff]  ;;  %v302_v2 = vld [vmem:[%s1542_s1 + $0x30] sm:$0xff]  ;;  %v301_v3 = vld [vmem:[%s1542_s1 + $0x28] sm:$0xff]  ;;  %s276_s21 = scalar_select %p275_p10, %s1273_s18, 31  ;;  %vm311_vm0 = vcmask 523264   ;;  %vm1176_vm1 = vmmov 0  }
  0x17   : > { %963 = vmatprep.subr.mxu0 %v303_v1  ;;  %v300_v4 = vld [vmem:[%s1542_s1 + $0x20] sm:$0xff]  ;;  %v299_v5 = vld [vmem:[%s1542_s1 + $0x18] sm:$0xff]  ;;  %v298_v7 = vld [vmem:[%s1542_s1 + $0x10] sm:$0xff] }
  0x18   : > { %964 = vmatpush3.msra.mxu0 %v303_v1  ;;  %s899_s24 = sshll.u32 %s276_s21, 3  ;;  %v297_v8 = vld [vmem:[%s1542_s1 + $0x8] sm:$0xff]  ;;  %v296_v9 = vld [vmem:[%s1542_s1] sm:$0xff] }
  0x19   : > { %965 = vmatprep.subr.mxu0 %v302_v2  ;;  %s1289_s10 = scalar_lea.vmem %s1541_s0, %s899_s24  ;;  %v900_v37 = vld [vmem:[%s1543_s2] ss:$0 sm:$0xff]  ;;  %s1119_s24 = scalar_lea.vmem %s1118_s23, 32 }
  0x1a   : > { %966 = vmatpush3.msra.mxu0 %v302_v2  ;;  %v280_v6 = vld [vmem:[%s1289_s10] sm:$0xff]  ;;  %v281_v10 = vld [vmem:[%s1289_s10 + $0x8] sm:$0xff]  ;;  %v282_v11 = vld [vmem:[%s1289_s10 + $0x10] sm:$0xff] }
  0x1b   : > { %967 = vmatprep.subr.mxu0 %v301_v3  ;;  %979 = vmatprep.mubr.msk.f32.mxu0 %vm311_vm0, %v280_v6  ;;  %v283_v12 = vld [vmem:[%s1289_s10 + $0x18] sm:$0xff]  ;;  %v284_v13 = vld [vmem:[%s1289_s10 + $0x20] sm:$0xff]  ;;  %v285_v14 = vld [vmem:[%s1289_s10 + $0x28] sm:$0xff] }
  0x1c   : > { %968 = vmatpush3.msra.mxu0 %v301_v3  ;;  %v286_v15 = vld [vmem:[%s1289_s10 + $0x30] sm:$0xff]  ;;  %v287_v16 = vld [vmem:[%s1289_s10 + $0x38] sm:$0xff]  ;;  %v288_v17 = vld [vmem:[%s1289_s10 + $0x40] sm:$0xff] }
  0x1d   : > { %969 = vmatprep.subr.mxu0 %v300_v4  ;;  %v289_v18 = vld [vmem:[%s1289_s10 + $0x48] sm:$0xff]  ;;  %v290_v19 = vld [vmem:[%s1289_s10 + $0x50] sm:$0xff]  ;;  %v291_v20 = vld [vmem:[%s1289_s10 + $0x58] sm:$0xff] }
  0x1e   : > { %970 = vmatpush3.msra.mxu0 %v300_v4  ;;  %v292_v21 = vld [vmem:[%s1289_s10 + $0x60] sm:$0xff]  ;;  %v293_v22 = vld [vmem:[%s1289_s10 + $0x68] sm:$0xff]  ;;  %v294_v23 = vld [vmem:[%s1289_s10 + $0x70] sm:$0xff] }
  0x1f   : > { %971 = vmatprep.subr.mxu0 %v299_v5  ;;  %v295_v24 = vld [vmem:[%s1289_s10 + $0x78] sm:$0xff]  ;;  %s272_s10 = sand.u32 1, %s1165_s27  }
  0x20   : > { %972 = vmatpush3.msra.mxu0 %v299_v5  ;;  %s273_s14 = scalar_lea.vmem [#allocation3], %s272_s10  ;;  %s827_s20 = scalar_lea.sflag [#allocation4], %s272_s10 }
  0x21   : > { %973 = vmatprep.subr.mxu0 %v298_v7  ;;  %s839_s15 = sshll.u32 %s273_s14, 4  ;;  %s840_s15 = int_to_ptr.vmem [resolvable:$true] %s839_s15 }
  0x22   : > { %974 = vmatpush3.msra.mxu0 %v298_v7  ;;  %s1113_s21 = scalar_lea.vmem %s840_s15, 16  ;;  %p1120_p0 = scmp.lt.s32.totalorder %s840_s15, %s1118_s23 }
  0x23   : > { %975 = vmatprep.subr.mxu0 %v297_v8  ;;  %p1114_p11 = scmp.ne.s32.totalorder %s840_s15, %s1113_s21  ;;  %p1121_p1 = scmp.lt.s32.totalorder %s1119_s24, %s1113_s21 }
  0x24   : > { %976 = vmatpush3.msra.mxu0 %v297_v8 }
  0x25   : > { %977 = vmatprep.subr.mxu0 %v296_v9  ;;  %p1115_p12 = pnand %p1114_p11, %p1257_p5  ;;  %p1122_p2 = por %p1121_p1, %p1120_p0 }
  0x26   : > { %978 = vmatpush3.msra.mxu0 %v296_v9 }
  0x27   : > { %980 = vmatmul.mubr.msk.f32.vlgmr.msra.gmra.mxu0 %vm311_vm0, %v281_v10  ;;  %p1116_p13 = pneg %p1115_p12 }
  0x28   : > { %982 = vmatprep.mubr.msk.f32.mxu0 %vm311_vm0, %v282_v11 }
  0x29   : > { %p1123_p3 = pnand %p1122_p2, %p1116_p13 }
  0x2b   : > { %983 = vmatmul.mubr.msk.f32.gmra.mxu0 %vm311_vm0, %v283_v12 }
  0x2c   : > { %985 = vmatprep.mubr.msk.f32.mxu0 %vm311_vm0, %v284_v13 }
  0x2f   : > { %986 = vmatmul.mubr.msk.f32.gmra.mxu0 %vm311_vm0, %v285_v14 }
  0x30   : > { %988 = vmatprep.mubr.msk.f32.mxu0 %vm311_vm0, %v286_v15 }
  0x33   : > { %989 = vmatmul.mubr.msk.f32.gmra.mxu0 %vm311_vm0, %v287_v16 }
  0x34   : > { %991 = vmatprep.mubr.msk.f32.mxu0 %vm311_vm0, %v288_v17 }
  0x37   : > { %992 = vmatmul.mubr.msk.f32.gmra.mxu0 %vm311_vm0, %v289_v18 }
  0x38   : > { %994 = vmatprep.mubr.msk.f32.mxu0 %vm311_vm0, %v290_v19 }
  0x3b   : > { %995 = vmatmul.mubr.msk.f32.gmra.mxu0 %vm311_vm0, %v291_v20 }
  0x3c   : > { %997 = vmatprep.mubr.msk.f32.mxu0 %vm311_vm0, %v292_v21 }
  0x3f   : > { %998 = vmatmul.mubr.msk.f32.gmra.mxu0 %vm311_vm0, %v293_v22 }
  0x40   : > { %1000 = vmatprep.mubr.msk.f32.mxu0 %vm311_vm0, %v294_v23 }
  0x43   : > { %1001 = vmatmul.mubr.msk.f32.gmra.mxu0 %vm311_vm0, %v295_v24 }
  0xe7   : > { %v981_v25 = vpop.f32.mrf.mxu0 }
  0xe8   : > { %v1350_v57 = vadd.f32 %v981_v25, %v900_v37 }
  0xe9   : > { %v426_v26 = vpop.f32.mrf.mxu0 }
  0xea   : > { %v1344_v55 = vadd.f32 %v900_v37, %v426_v26 }
  0xeb   : > { %v984_v27 = vpop.f32.mrf.mxu0 }
  0xec   : > { %v1346_v56 = vadd.f32 %v984_v27, %v900_v37 }
  0xed   : > { %v436_v28 = vpop.f32.mrf.mxu0 }
  0xee   : > { %v1341_v53 = vadd.f32 %v900_v37, %v436_v28 }
  0xef   : > { %v987_v29 = vpop.f32.mrf.mxu0 }
  0xf0   : > { %v452_v54 = vadd.f32 %v987_v29, %v900_v37 }
  0xf1   : > { %v446_v30 = vpop.f32.mrf.mxu0 }
  0xf2   : > { %v1338_v51 = vadd.f32 %v900_v37, %v446_v30 }
  0xf3   : > { %v990_v31 = vpop.f32.mrf.mxu0 }
  0xf4   : > { %v462_v52 = vadd.f32 %v990_v31, %v900_v37 }
  0xf5   : > { %v456_v32 = vpop.f32.mrf.mxu0 }
  0xf6   : > { %v1335_v49 = vadd.f32 %v900_v37, %v456_v32 }
  0xf7   : > { %v993_v33 = vpop.f32.mrf.mxu0 }
  0xf8   : > { %v472_v50 = vadd.f32 %v993_v33, %v900_v37 }
  0xf9   : > { %v466_v34 = vpop.f32.mrf.mxu0 }
  0xfa   : > { %v467_v47 = vadd.f32 %v900_v37, %v466_v34 }
  0xfb   : > { %v996_v35 = vpop.f32.mrf.mxu0 }
  0xfc   : > { %v482_v48 = vadd.f32 %v996_v35, %v900_v37 }
  0xfd   : > { %v476_v36 = vpop.f32.mrf.mxu0 }
  0xfe   : > { %v477_v45 = vadd.f32 %v900_v37, %v476_v36 }
  0xff   : > { %v999_v38 = vpop.f32.mrf.mxu0 }
 0x100   : > { %v492_v39 = vadd.f32 %v999_v38, %v900_v37 }
 0x101   : > { %v486_v40 = vpop.f32.mrf.mxu0 }
 0x102   : > { %531 = vadd.xlane.f32.xlu1 %v492_v39  ;;  %v487_v42 = vadd.f32 %v900_v37, %v486_v40 }
 0x103   : > { %v1002_v41 = vpop.f32.mrf.mxu0 }
 0x104   : > { %v502_v43 = vadd.f32 %v1002_v41, %v900_v37 }
 0x105   : > { %v496_v44 = vpop.f32.mrf.mxu0 }
 0x106   : > { %535 = vadd.xlane.f32.xlu0 %v502_v43  ;;  %529 = vadd.xlane.f32.xlu1 %v487_v42  ;;  %v497_v46 = vadd.f32 %v900_v37, %v496_v44 }
 0x10a   : > { %533 = vadd.xlane.f32.xlu0 %v497_v46  ;;  %525 = vadd.xlane.f32.xlu1 %v477_v45 }
 0x10e   : > { %527 = vadd.xlane.f32.xlu0 %v482_v48  ;;  %521 = vadd.xlane.f32.xlu1 %v467_v47 }
 0x112   : > { %523 = vadd.xlane.f32.xlu0 %v472_v50  ;;  %517 = vadd.xlane.f32.xlu1 %v1335_v49 }
 0x116   : > { %519 = vadd.xlane.f32.xlu0 %v462_v52  ;;  %513 = vadd.xlane.f32.xlu1 %v1338_v51 }
 0x11a   : > { %515 = vadd.xlane.f32.xlu0 %v452_v54  ;;  %509 = vadd.xlane.f32.xlu1 %v1341_v53 }
 0x11e   : > { %511 = vadd.xlane.f32.xlu0 %v1346_v56  ;;  %505 = vadd.xlane.f32.xlu1 %v1344_v55 }
 0x122   : > { %507 = vadd.xlane.f32.xlu0 %v1350_v57 }
 0x18b   : > { %v532_v58 = vpop.xlane.xlu1 %531 }
 0x18c   : > { %v551_v61 = vmul.f32 0.0078125, %v532_v58 }
 0x18e   : > { %v1355_v2 = vsub.f32 %v492_v39, %v551_v61 }
 0x18f   : > { %v536_v59 = vpop.xlane.xlu0 %535  ;;  %v530_v60 = vpop.xlane.xlu1 %529 }
 0x190   : > { %v553_v62 = vmul.f32 0.0078125, %v536_v59  ;;  %v550_v3 = vmul.f32 0.0078125, %v530_v60  ;;  %v583_v12 = vmul.f32 %v1355_v2, %v1355_v2  ;;  %v1175_v60 = vmov 0.0  }
 0x191   : > { %1003 = vmatprep.subr.mxu1 %v1175_v60  ;;  %1035 = vmatprep.mubr.msk.f32.mxu1 %vm1176_vm1, %v1175_v60 }
 0x192   : > { %v1353_v63 = vsub.f32 %v502_v43, %v553_v62  ;;  %v1361_v10 = vsub.f32 %v487_v42, %v550_v3 }
 0x193   : > { %v534_v0 = vpop.xlane.xlu0 %533  ;;  %v526_v1 = vpop.xlane.xlu1 %525 }
 0x194   : > { %v552_v4 = vmul.f32 0.0078125, %v534_v0  ;;  %v585_v5 = vmul.f32 %v1353_v63, %v1353_v63  ;;  %v548_v7 = vmul.f32 0.0078125, %v526_v1  ;;  %v582_v21 = vmul.f32 %v1361_v10, %v1361_v10 }
 0x196   : > { %v1359_v6 = vsub.f32 %v497_v46, %v552_v4  ;;  %616 = vadd.xlane.f32.xlu0 %v585_v5  ;;  %v1369_v15 = vsub.f32 %v477_v45, %v548_v7 }
 0x197   : > { %v528_v8 = vpop.xlane.xlu0 %527  ;;  %v522_v9 = vpop.xlane.xlu1 %521 }
 0x198   : > { %v549_v11 = vmul.f32 0.0078125, %v528_v8  ;;  %v584_v13 = vmul.f32 %v1359_v6, %v1359_v6  ;;  %v546_v18 = vmul.f32 0.0078125, %v522_v9  ;;  %v580_v25 = vmul.f32 %v1369_v15, %v1369_v15 }
 0x19a   : > { %v1367_v14 = vsub.f32 %v482_v48, %v549_v11  ;;  %612 = vadd.xlane.f32.xlu0 %v583_v12  ;;  %614 = vadd.xlane.f32.xlu1 %v584_v13  ;;  %v1379_v26 = vsub.f32 %v467_v47, %v546_v18 }
 0x19b   : > { %v524_v16 = vpop.xlane.xlu0 %523  ;;  %v518_v17 = vpop.xlane.xlu1 %517 }
 0x19c   : > { %v547_v19 = vmul.f32 0.0078125, %v524_v16  ;;  %v581_v20 = vmul.f32 %v1367_v14, %v1367_v14  ;;  %v544_v27 = vmul.f32 0.0078125, %v518_v17  ;;  %v578_v37 = vmul.f32 %v1379_v26, %v1379_v26 }
 0x19e   : > { %v1375_v22 = vsub.f32 %v472_v50, %v547_v19  ;;  %608 = vadd.xlane.f32.xlu0 %v581_v20  ;;  %610 = vadd.xlane.f32.xlu1 %v582_v21  ;;  %v1386_v34 = vsub.f32 %v1335_v49, %v544_v27 }
 0x19f   : > { %v520_v23 = vpop.xlane.xlu0 %519  ;;  %v514_v24 = vpop.xlane.xlu1 %513 }
 0x1a0   : > { %v545_v28 = vmul.f32 0.0078125, %v520_v23  ;;  %v579_v29 = vmul.f32 %v1375_v22, %v1375_v22  ;;  %v542_v31 = vmul.f32 0.0078125, %v514_v24  ;;  %v576_v44 = vmul.f32 %v1386_v34, %v1386_v34 }
 0x1a2   : > { %v1383_v30 = vsub.f32 %v462_v52, %v545_v28  ;;  %604 = vadd.xlane.f32.xlu0 %v579_v29  ;;  %606 = vadd.xlane.f32.xlu1 %v580_v25  ;;  %v1395_v39 = vsub.f32 %v1338_v51, %v542_v31  ;;  %v1428_v31 = vld [vmem:[%s1544_s3] ss:$0 sm:$0xff] }
 0x1a3   : > { %v516_v32 = vpop.xlane.xlu0 %515  ;;  %v510_v33 = vpop.xlane.xlu1 %509 }
 0x1a4   : > { %v543_v35 = vmul.f32 0.0078125, %v516_v32  ;;  %v577_v36 = vmul.f32 %v1383_v30, %v1383_v30  ;;  %v540_v41 = vmul.f32 0.0078125, %v510_v33  ;;  %v574_v48 = vmul.f32 %v1395_v39, %v1395_v39  ;;  %v1434_v33 = vld [vmem:[%s1545_s4] ss:$0 sm:$0xff] }
 0x1a6   : > { %v1392_v38 = vsub.f32 %v452_v54, %v543_v35  ;;  %600 = vadd.xlane.f32.xlu0 %v577_v36  ;;  %602 = vadd.xlane.f32.xlu1 %v578_v37  ;;  %v1407_v49 = vsub.f32 %v1341_v53, %v540_v41 }
 0x1a7   : > { %v512_v40 = vpop.xlane.xlu0 %511  ;;  %v506_v45 = vpop.xlane.xlu1 %505 }
 0x1a8   : > { %v541_v42 = vmul.f32 0.0078125, %v512_v40  ;;  %v575_v43 = vmul.f32 %v1392_v38, %v1392_v38  ;;  %v538_v50 = vmul.f32 0.0078125, %v506_v45  ;;  %v572_v53 = vmul.f32 %v1407_v49, %v1407_v49 }
 0x1aa   : > { %v1402_v46 = vsub.f32 %v1346_v56, %v541_v42  ;;  %596 = vadd.xlane.f32.xlu0 %v575_v43  ;;  %598 = vadd.xlane.f32.xlu1 %v576_v44  ;;  %v1415_v56 = vsub.f32 %v1344_v55, %v538_v50  ;;  %v745_v55 = vld [vmem:[#allocation2] sm:$0x1] }
 0x1ab   : > { %v508_v47 = vpop.xlane.xlu0 %507 }
 0x1ac   : > { %v539_v51 = vmul.f32 0.0078125, %v508_v47  ;;  %v573_v52 = vmul.f32 %v1402_v46, %v1402_v46  ;;  %v570_v59 = vmul.f32 %v1415_v56, %v1415_v56 }
 0x1ae   : > { %v1412_v54 = vsub.f32 %v1350_v57, %v539_v51  ;;  %592 = vadd.xlane.f32.xlu0 %v573_v52  ;;  %594 = vadd.xlane.f32.xlu1 %v574_v48  ;;  %v1177_v57 = vmov 0  }
 0x1af   : > { %1080 = vset.pattern.permute.xlu0 %v1177_v57 }
 0x1b0   : > { %v571_v58 = vmul.f32 %v1412_v54, %v1412_v54 }
 0x1b2   : > { %588 = vadd.xlane.f32.xlu0 %v571_v58  ;;  %590 = vadd.xlane.f32.xlu1 %v572_v53 }
 0x1b6   : > { %586 = vadd.xlane.f32.xlu1 %v570_v59 }
 0x1c8   : > { %748 = vperm.xlu0 %1080, %v745_v55  }
 0x21f   : > { %v617_v61 = vpop.xlane.xlu0 %616 }
 0x220   : > { %v633_v62 = vmul.f32 0.0078125, %v617_v61 }
 0x222   : > { %v649_v0 = vadd.f32 1e-05, %v633_v62 }
 0x223   : > { %v613_v1 = vpop.xlane.xlu0 %612  ;;  %v615_v3 = vpop.xlane.xlu1 %614 }
 0x224   : > { %1081 = vrsqrt.f32 %v649_v0  ;;  %v631_v4 = vmul.f32 0.0078125, %v613_v1  ;;  %v632_v5 = vmul.f32 0.0078125, %v615_v3 }
 0x226   : > { %v647_v7 = vadd.f32 1e-05, %v631_v4  ;;  %v648_v8 = vadd.f32 1e-05, %v632_v5 }
 0x227   : > { %v609_v9 = vpop.xlane.xlu0 %608  ;;  %v611_v11 = vpop.xlane.xlu1 %610 }
 0x228   : > { %1083 = vrsqrt.f32 %v647_v7  ;;  %v629_v12 = vmul.f32 0.0078125, %v609_v9  ;;  %v630_v13 = vmul.f32 0.0078125, %v611_v11 }
 0x229   : > { %1085 = vrsqrt.f32 %v648_v8 }
 0x22a   : > { %v645_v16 = vadd.f32 1e-05, %v629_v12  ;;  %v646_v17 = vadd.f32 1e-05, %v630_v13 }
 0x22b   : > { %v605_v18 = vpop.xlane.xlu0 %604  ;;  %v607_v19 = vpop.xlane.xlu1 %606 }
 0x22c   : > { %1087 = vrsqrt.f32 %v645_v16  ;;  %v628_v20 = vmul.f32 0.0078125, %v607_v19  ;;  %v627_v21 = vmul.f32 0.0078125, %v605_v18 }
 0x22d   : > { %1089 = vrsqrt.f32 %v646_v17 }
 0x22e   : > { %v644_v23 = vadd.f32 1e-05, %v628_v20  ;;  %v643_v27 = vadd.f32 1e-05, %v627_v21 }
 0x22f   : > { %v603_v24 = vpop.xlane.xlu1 %602  ;;  %v601_v28 = vpop.xlane.xlu0 %600 }
 0x230   : > { %1091 = vrsqrt.f32 %v644_v23  ;;  %v626_v29 = vmul.f32 0.0078125, %v603_v24  ;;  %v625_v35 = vmul.f32 0.0078125, %v601_v28 }
 0x231   : > { %v1082_v25 = vpop.eup %1081  ;;  %1093 = vrsqrt.f32 %v643_v27 }
 0x232   : > { %v681_v32 = vmul.f32 %v1082_v25, %v1353_v63  ;;  %v642_v40 = vadd.f32 1e-05, %v626_v29  ;;  %v641_v63 = vadd.f32 1e-05, %v625_v35 }
 0x233   : > { %v599_v41 = vpop.xlane.xlu1 %598  ;;  %v597_v51 = vpop.xlane.xlu0 %596 }
 0x234   : > { %v704_v36 = vmul.f32 %v1428_v31, %v681_v32  ;;  %v624_v47 = vmul.f32 0.0078125, %v599_v41  ;;  %1095 = vrsqrt.f32 %v642_v40 }
 0x235   : > { %v1084_v37 = vpop.eup %1083  ;;  %1097 = vrsqrt.f32 %v641_v63 }
 0x236   : > { %v1086_v42 = vpop.eup %1085  ;;  %v727_v43 = vadd.f32 %v1434_v33, %v704_v36  ;;  %v679_v44 = vmul.f32 %v1084_v37, %v1355_v2  ;;  %v640_v55 = vadd.f32 1e-05, %v624_v47 }
 0x237   : > { %v680_v45 = vmul.f32 %v1086_v42, %v1359_v6  ;;  %v623_v6 = vmul.f32 0.0078125, %v597_v51  ;;  %v595_v57 = vpop.xlane.xlu1 %594  ;;  %v593_v7 = vpop.xlane.xlu0 %592 }
 0x238   : > { %v743_v48 = vmax.f32 %v727_v43, 0.0  ;;  %v702_v58 = vmul.f32 %v1428_v31, %v679_v44  ;;  %1099 = vrsqrt.f32 %v640_v55  ;;  %v622_v5 = vmul.f32 0.0078125, %v595_v57 }
 0x239   : > { %v1088_v50 = vpop.eup %1087  ;;  %v703_v52 = vmul.f32 %v1428_v31, %v680_v45  ;;  %v639_v4 = vadd.f32 1e-05, %v623_v6  ;;  %v621_v13 = vmul.f32 0.0078125, %v593_v7 }
 0x23a   : > { %v1090_v53 = vpop.eup %1089  ;;  %1004 = vmatpush3.xpose.msra.mxu1 %v743_v48  ;;  %v725_v62 = vadd.f32 %v1434_v33, %v702_v58  ;;  %v677_v1 = vmul.f32 %v1088_v50, %v1367_v14  ;;  %v638_v14 = vadd.f32 1e-05, %v622_v5 }
 0x23b   : > { %1005 = vmatprep.subr.mxu1 %v1175_v60  ;;  %v726_v59 = vadd.f32 %v1434_v33, %v703_v52  ;;  %v678_v2 = vmul.f32 %v1090_v53, %v1361_v10  ;;  %1101 = vrsqrt.f32 %v639_v4  ;;  %v591_v16 = vpop.xlane.xlu1 %590  ;;  %v637_v23 = vadd.f32 1e-05, %v621_v13  ;;  %v589_v25 = vpop.xlane.xlu0 %588 }
 0x23c   : > { %v741_v10 = vmax.f32 %v725_v62, 0.0  ;;  %v700_v9 = vmul.f32 %v1428_v31, %v677_v1  ;;  %1103 = vrsqrt.f32 %v638_v14  ;;  %v619_v35 = vmul.f32 0.0078125, %v589_v25 }
 0x23d   : > { %v742_v61 = vmax.f32 %v726_v59, 0.0  ;;  %v701_v0 = vmul.f32 %v1428_v31, %v678_v2  ;;  %v1092_v3 = vpop.eup %1091  ;;  %1105 = vrsqrt.f32 %v637_v23 }
 0x23e   : > { %v676_v11 = vmul.f32 %v1092_v3, %v1369_v15  ;;  %v1094_v12 = vpop.eup %1093  ;;  %v723_v18 = vadd.f32 %v1434_v33, %v700_v9  ;;  %v620_v15 = vmul.f32 0.0078125, %v591_v16  ;;  %v635_v44 = vadd.f32 1e-05, %v619_v35 }
 0x23f   : > { %1006 = vmatpush3.xpose.msra.mxu1 %v742_v61  ;;  %v724_v8 = vadd.f32 %v1434_v33, %v701_v0  ;;  %v675_v20 = vmul.f32 %v1094_v12, %v1375_v22  ;;  %v587_v37 = vpop.xlane.xlu1 %586 }
 0x240   : > { %1007 = vmatprep.subr.mxu1 %v1175_v60  ;;  %v699_v19 = vmul.f32 %v1428_v31, %v676_v11  ;;  %v739_v27 = vmax.f32 %v723_v18, 0.0  ;;  %v636_v22 = vadd.f32 1e-05, %v620_v15  ;;  %v618_v45 = vmul.f32 0.0078125, %v587_v37 }
 0x241   : > { %v740_v17 = vmax.f32 %v724_v8, 0.0  ;;  %v1096_v21 = vpop.eup %1095  ;;  %v698_v29 = vmul.f32 %v1428_v31, %v675_v20  ;;  %v744_v20 = vld [vmem:[%s1546_s5] sm:$0x1] }
 0x242   : > { %v1098_v24 = vpop.eup %1097  ;;  %v722_v28 = vadd.f32 %v1434_v33, %v699_v19  ;;  %v674_v32 = vmul.f32 %v1096_v21, %v1379_v26  ;;  %1107 = vrsqrt.f32 %v636_v22  ;;  %v634_v51 = vadd.f32 1e-05, %v618_v45 }
 0x243   : > { %1008 = vmatpush3.xpose.msra.mxu1 %v741_v10  ;;  %v721_v41 = vadd.f32 %v1434_v33, %v698_v29  ;;  %v673_v43 = vmul.f32 %v1098_v24, %v1383_v30  ;;  %1109 = vrsqrt.f32 %v635_v44  ;;  %v751_v21 = vlaneseq  ;;  %v749_v15 = vpop.permute.xlu0 %748 }
 0x244   : > { %1009 = vmatprep.subr.mxu1 %v1175_v60  ;;  %v738_v40 = vmax.f32 %v722_v28, 0.0  ;;  %v697_v42 = vmul.f32 %v1428_v31, %v674_v32  ;;  %1111 = vrsqrt.f32 %v634_v51 }
 0x245   : > { %v1100_v36 = vpop.eup %1099  ;;  %v737_v63 = vmax.f32 %v721_v41, 0.0  ;;  %v696_v48 = vmul.f32 %v1428_v31, %v673_v43  ;;  %v752_v23 = vshrl.u32 %v751_v21, 7 }
 0x246   : > { %v720_v47 = vadd.f32 %v1434_v33, %v697_v42  ;;  %v672_v50 = vmul.f32 %v1100_v36, %v1386_v34 }
 0x247   : > { %1010 = vmatpush3.xpose.msra.mxu1 %v740_v17  ;;  %v719_v58 = vadd.f32 %v1434_v33, %v696_v48 }
 0x248   : > { %1011 = vmatprep.subr.mxu1 %v1175_v60  ;;  %v1102_v26 = vpop.eup %1101  ;;  %v736_v52 = vmax.f32 %v720_v47, 0.0  ;;  %v695_v53 = vmul.f32 %v1428_v31, %v672_v50 }
 0x249   : > { %v1104_v30 = vpop.eup %1103  ;;  %v671_v59 = vmul.f32 %v1102_v26, %v1392_v38  ;;  %v735_v6 = vmax.f32 %v719_v58, 0.0 }
 0x24a   : > { %v1106_v2 = vpop.eup %1105  ;;  %v718_v34 = vadd.f32 %v1434_v33, %v695_v53  ;;  %v670_v57 = vmul.f32 %v1104_v30, %v1395_v39 }
 0x24b   : > { %1012 = vmatpush3.xpose.msra.mxu1 %v739_v27  ;;  %v694_v55 = vmul.f32 %v1428_v31, %v671_v59  ;;  %v669_v1 = vmul.f32 %v1106_v2, %v1402_v46 }
 0x24c   : > { %1013 = vmatprep.subr.mxu1 %v1175_v60  ;;  %v734_v62 = vmax.f32 %v718_v34, 0.0  ;;  %v693_v38 = vmul.f32 %v1428_v31, %v670_v57 }
 0x24d   : > { %v717_v0 = vadd.f32 %v1434_v33, %v694_v55  ;;  %v692_v39 = vmul.f32 %v1428_v31, %v669_v1 }
 0x24e   : > { %v716_v5 = vadd.f32 %v1434_v33, %v693_v38 }
 0x24f   : > { %1014 = vmatpush3.xpose.msra.mxu1 %v738_v40  ;;  %v1108_v61 = vpop.eup %1107  ;;  %v733_v4 = vmax.f32 %v717_v0, 0.0  ;;  %v715_v9 = vadd.f32 %v1434_v33, %v692_v39 }
 0x250   : > { %1015 = vmatprep.subr.mxu1 %v1175_v60  ;;  %v1110_v3 = vpop.eup %1109  ;;  %v668_v7 = vmul.f32 %v1108_v61, %v1407_v49  ;;  %v732_v8 = vmax.f32 %v716_v5, 0.0 }
 0x251   : > { %v1112_v10 = vpop.eup %1111  ;;  %v667_v11 = vmul.f32 %v1110_v3, %v1412_v54  ;;  %v731_v12 = vmax.f32 %v715_v9, 0.0 }
 0x252   : > { %v691_v46 = vmul.f32 %v1428_v31, %v668_v7  ;;  %v666_v49 = vmul.f32 %v1112_v10, %v1415_v56 }
 0x253   : > { %1016 = vmatpush3.xpose.msra.mxu1 %v737_v63  ;;  %v690_v14 = vmul.f32 %v1428_v31, %v667_v11 }
 0x254   : > { %1017 = vmatprep.subr.mxu1 %v1175_v60  ;;  %v714_v13 = vadd.f32 %v1434_v33, %v691_v46  ;;  %v689_v18 = vmul.f32 %v1428_v31, %v666_v49  ;;  %v753_v31 = vsub.s32 0, %v752_v23 }
 0x255   : > { %v713_v17 = vadd.f32 %v1434_v33, %v690_v14 }
 0x256   : > { %v730_v16 = vmax.f32 %v714_v13, 0.0  ;;  %v712_v19 = vadd.f32 %v1434_v33, %v689_v18  ;;  %v754_v24 = vrot.slane %v749_v15, %v753_v31 }
 0x257   : > { %1018 = vmatpush3.xpose.msra.mxu1 %v736_v52  ;;  %v729_v54 = vmax.f32 %v713_v17, 0.0 }
 0x258   : > { %1019 = vmatprep.subr.mxu1 %v1175_v60  ;;  %v728_v56 = vmax.f32 %v712_v19, 0.0 }
 0x25b   : > { %1020 = vmatpush3.xpose.msra.mxu1 %v735_v6 }
 0x25c   : > { %1021 = vmatprep.subr.mxu1 %v1175_v60 }
 0x25f   : > { %1022 = vmatpush3.xpose.msra.mxu1 %v734_v62 }
 0x260   : > { %1023 = vmatprep.subr.mxu1 %v1175_v60 }
 0x263   : > { %1024 = vmatpush3.xpose.msra.mxu1 %v733_v4 }
 0x264   : > { %1025 = vmatprep.subr.mxu1 %v1175_v60 }
 0x267   : > { %1026 = vmatpush3.xpose.msra.mxu1 %v732_v8 }
 0x268   : > { %1027 = vmatprep.subr.mxu1 %v1175_v60 }
 0x26b   : > { %1028 = vmatpush3.xpose.msra.mxu1 %v731_v12 }
 0x26c   : > { %1029 = vmatprep.subr.mxu1 %v1175_v60 }
 0x26f   : > { %1030 = vmatpush3.xpose.msra.mxu1 %v730_v16 }
 0x270   : > { %1031 = vmatprep.subr.mxu1 %v1175_v60 }
 0x273   : > { %1032 = vmatpush3.xpose.msra.mxu1 %v729_v54 }
 0x274   : > { %1033 = vmatprep.subr.mxu1 %v1175_v60 }
 0x277   : > { %1034 = vmatpush3.xpose.msra.mxu1 %v728_v56 }
 0x27a   : > { %1036 = vmatmul.mubr.f32.vlgmr.msra.gmra.mxu1 %v744_v20 }
 0x33a   : > { %v821_v33 = vpop.f32.mrf.mxu1 }
 0x33b   : > { %v822_v25 = vadd.f32 %v821_v33, %v754_v24 }
 0x33c   : > { %v1037_v60 = vpop.f32.mrf.mxu1 }
 0x33d   : > { %825 = vst [vmem:[%s273_s14] sm:$0x1] %v822_v25 }
 0x33e   : > { %1126 = shalt.err (!%p1123_p3)
}
 0x33f   : > { %s1127_s18 = scalar_lea.hbm %s1506_s19, 16  ;;  %s1131_s30 = scalar_lea.hbm %s1548_s7, 32 }
 0x340   : > { %p1128_p4 = scmp.ne.s32.totalorder %s1506_s19, %s1127_s18  ;;  %p1132_p9 = scmp.lt.s32.totalorder %s1506_s19, %s1548_s7 }
 0x341   : > { %p1133_p10 = scmp.lt.s32.totalorder %s1131_s30, %s1127_s18 }
 0x342   : > { %p1129_p7 = pnand %p1128_p4, %p1257_p5 }
 0x343   : > { %p1134_p11 = por %p1133_p10, %p1132_p9 }
 0x344   : > { %p1130_p8 = pneg %p1129_p7 }
 0x346   : > { %p1135_p12 = pnand %p1134_p11, %p1130_p8 }
 0x348   : > { %1138 = shalt.err (!%p1135_p12)
}
 0x349   : > { %1038 = dma.vmem_to_hbm [thread:$0]  (%p1257_p5), %s840_s15, 16, %s1506_s19, %s827_s20  }
 0x34a PF: > { %p1044_p13 = scmp.ge.s32.totalorder %s1173_s29, 2  ;;  %s851_s14 = sand.u32 1, %s1161_s26  }
 0x34b   : > { %s852_s16 = scalar_lea.sflag [#allocation4], %s851_s14 }
 0x34c   : > { %p1041_p0 = pnand %p1044_p13, %p1261_p6 }
 0x34e   : > { %p1042_p1 = pneg %p1041_p0 }
 0x350   : > { %1156 = dma.done.wait (%p1042_p1), %s852_s16, 16  }
 0x351   : > { %1158 = vsyncadd (%p1042_p1), %s852_s16, 4294967280  ;;  %p19_p2 = scmp.ge.s32.totalorder %s1245_s8, 4   ;;  %s1551_s26 = smov %s1165_s27 }
 0x352   : > { %s1552_s27 = smov %s1169_s28  ;;  %s1553_s28 = smov %s1255_s11 }
 0x353   : > { %s1554_s29 = smov %s1245_s8  ;;  %21 = sbr.rel (!%p19_p2) target bundleno = 6 (0x6), region = 83 }
 0x358   :  { %856 = vsyncpa [#allocation4], 1 }
 0x359   :  { %858 = vsyncpa [#allocation4 + $0x1], 1 }

</bundles_post_ra>
